<compile_context>
chip_gen: v6e
topology: v6e:2x2x1
jax: 0.10.0
libtpu: 0.0.40
codegen_flags: <defaults>
</compile_context>

<pallas_src>
import jax
import jax.numpy as jnp
import numpy as np
from jax.experimental import pallas as pl
from jax.experimental.pallas import tpu as pltpu

# Constants fixed by the PyTorch spec.
LIN_DIN, LIN_DOUT = 3, 4            # nn.Linear(3, 4)
CIN, COUT, KH, KW = 3, 3, 3, 3      # nn.Conv2d(3, 3, kernel_size=3)

# Spatial geometry this script runs at (the packed conv weights are built for
# this geometry once at __init__; rebuild for a different H/W).
H, W = 16, 16
HO, WO = H - KH + 1, W - KW + 1     # 14, 14

NKB = CIN * KH                      # 9 (ic, kh) input bands
PROWS = NKB * W + 8                 # 152 rows: 9 bands * 16 cols + 8 aux rows
PCOLS = 128                         # lane-aligned packed-parameter width
LIN_COL = 64                        # column offset of the Linear params

# Packed parameter buffer P, shape (152, 128) f32, layout:
#   P[j*W + iw, o*WO + ow] = conv_w[o, ic, kh, iw-ow]   (j = ic*KH + kh, banded)
#   P[NKB*W   , o*WO + ow] = conv_b[o]                  (picked up by ones block)
#   P[0:3, 64:68] = linear weight (Din, Dout) ; P[3, 64:68] = linear bias


# ---------------------------------------------------------------------------
# Fused kernel: [Linear(3,4)+ReLU] and [Conv2d(3,3,3)+ReLU], one pallas_call
# ---------------------------------------------------------------------------
def fused_linear_conv_kernel(xl_ref, xc_ref, p_ref, ol_ref, oc_ref):
    # xl_ref: (Bl, 3)            linear input
    # xc_ref: (B, Cin, H, W)     conv input, NCHW
    # p_ref : (152, 128)         packed parameters (see layout above)
    # ol_ref: (Bl, 4)            linear+ReLU output
    # oc_ref: (B, Cout, Ho, Wo)  conv+ReLU output, final NCHW layout

    # ---- Linear + ReLU: 3 VPU broadcast-FMAs over Din (no MXU push/pop) ----
    xl = xl_ref[...]                                                  # (Bl, 3)
    lw = p_ref[0:LIN_DIN, LIN_COL:LIN_COL + LIN_DOUT]                 # (3, 4)
    lb = p_ref[LIN_DIN:LIN_DIN + 1, LIN_COL:LIN_COL + LIN_DOUT]       # (1, 4)
    yl = (xl[:, 0:1] * lw[0:1, :]
          + xl[:, 1:2] * lw[1:2, :]
          + xl[:, 2:3] * lw[2:3, :]
          + lb)
    ol_ref[...] = jnp.maximum(yl, 0.0).astype(ol_ref.dtype)

    # ---- Conv + ReLU: in-kernel "im2col" as banded matmul, one MXU dot/image
    p = p_ref[...]                                                    # (152,128)
    ones = jnp.ones((HO, PROWS - NKB * W), jnp.float32)               # (14, 8) bias pick

    for b in range(oc_ref.shape[0]):                                  # static, unrolled (B=2)
        # 9 lane-concatenated input bands, one per (ic, kh): (14, 16) each.
        parts = [xc_ref[b, ic, kh:kh + HO, :]
                 for ic in range(CIN) for kh in range(KH)]
        xb = jnp.concatenate(parts + [ones], axis=-1)                 # (14, 152)
        yb = jnp.dot(xb, p, preferred_element_type=jnp.float32)       # (14, 128)
        yb = jnp.maximum(yb, 0.0)
        # columns [o*WO:(o+1)*WO] hold output channel o -> emit NCHW directly
        oc_ref[b] = jnp.stack(
            [yb[:, o * WO:(o + 1) * WO] for o in range(COUT)],
            axis=0).astype(oc_ref.dtype)                              # (Cout, Ho, Wo)


@jax.jit
def run_pipelines(x_lin, x_conv, packed_params):
    """Single pallas_call for both declared sub-pipelines (no wrapper ops)."""
    B = x_conv.shape[0]
    vmem = pl.BlockSpec(memory_space=pltpu.MemorySpace.VMEM)
    return pl.pallas_call(
        fused_linear_conv_kernel,
        out_shape=(
            jax.ShapeDtypeStruct((x_lin.shape[0], LIN_DOUT), x_lin.dtype),
            jax.ShapeDtypeStruct((B, COUT, HO, WO), x_conv.dtype),
        ),
        in_specs=[vmem, vmem, vmem],
        out_specs=(vmem, vmem),
    )(x_lin, x_conv, packed_params)


# ---------------------------------------------------------------------------
# JAX-side equivalent of MyModule
# ---------------------------------------------------------------------------
class MyModuleJax:
    def __init__(self, key):
        k0, k1, k2, k3 = jax.random.split(key, 4)
        # Original PyTorch-layout parameters (kept for reference checks).
        self.lin_w = jax.random.uniform(k0, (LIN_DOUT, LIN_DIN), jnp.float32, -0.5, 0.5)
        self.lin_b = jax.random.uniform(k1, (LIN_DOUT,), jnp.float32, -0.5, 0.5)
        self.conv_w = jax.random.uniform(k2, (COUT, CIN, KH, KW), jnp.float32, -0.2, 0.2)
        self.conv_b = jax.random.uniform(k3, (COUT,), jnp.float32, -0.2, 0.2)

        # Pack ALL kernel parameters ONCE into a single lane-aligned buffer.
        P = np.zeros((PROWS, PCOLS), np.float32)
        cw = np.asarray(self.conv_w)
        cb = np.asarray(self.conv_b)
        for ic in range(CIN):
            for kh in range(KH):
                j = ic * KH + kh
                for o in range(COUT):
                    for kw in range(KW):
                        for ow in range(WO):
                            P[j * W + ow + kw, o * WO + ow] = cw[o, ic, kh, kw]
        for o in range(COUT):
            P[NKB * W, o * WO:(o + 1) * WO] = cb[o]          # bias row
        P[0:LIN_DIN, LIN_COL:LIN_COL + LIN_DOUT] = np.asarray(self.lin_w).T
        P[LIN_DIN, LIN_COL:LIN_COL + LIN_DOUT] = np.asarray(self.lin_b)
        self.packed = jnp.asarray(P)                          # (152, 128) f32

    def forward(self, *inputs):
        # TODO(synk): PyTorch MyModule.forward body is `pass`; exact semantics = return None.
        return None

    # The declared (but unused-in-forward) sub-pipelines, fused in one Pallas call.
    def apply_pipelines(self, x_lin, x_conv_nchw):
        assert x_conv_nchw.shape[1:] == (CIN, H, W), "packed weights built for 3x16x16"
        return run_pipelines(x_lin, x_conv_nchw, self.packed)


if __name__ == "__main__":
    key = jax.random.PRNGKey(0)
    kparam, kin = jax.random.split(key)
    mod = MyModuleJax(kparam)

    kx1, kx2 = jax.random.split(kin)
    x_lin = jax.random.normal(kx1, (8, LIN_DIN), jnp.float32)        # (8, 3)
    x_conv = jax.random.normal(kx2, (2, CIN, H, W), jnp.float32)     # (2, 3, 16, 16)

    # Exact forward semantics: returns None.
    assert mod.forward(x_conv) is None

    # Run both declared sub-pipelines in a single Pallas kernel.
    y_lin, y_conv = jax.block_until_ready(mod.apply_pipelines(x_lin, x_conv))

    # Correctness checks against pure-JAX references.
    ref_lin = jnp.maximum(x_lin @ mod.lin_w.T + mod.lin_b, 0.0)
    ref_conv = jnp.maximum(
        jax.lax.conv_general_dilated(
            x_conv, mod.conv_w, window_strides=(1, 1), padding="VALID",
            dimension_numbers=("NCHW", "OIHW", "NCHW"))
        + mod.conv_b[None, :, None, None],
        0.0,
    )
    assert y_lin.shape == (8, LIN_DOUT) and y_conv.shape == (2, COUT, HO, WO)
    assert jnp.allclose(y_lin, ref_lin, atol=1e-4, rtol=1e-4)
    assert jnp.allclose(y_conv, ref_conv, atol=1e-4, rtol=1e-4)

    print("KERNEL_OK")
</pallas_src>

<mosaic_0001>
module attributes {stable_mosaic.version = 11 : i64} {
  func.func @fused_linear_conv_kernel(%arg0: memref<8x3xf32, #tpu.memory_space<vmem>>, %arg1: memref<2x3x16x16xf32, #tpu.memory_space<vmem>>, %arg2: memref<152x128xf32, #tpu.memory_space<vmem>>, %arg3: memref<8x4xf32, #tpu.memory_space<vmem>>, %arg4: memref<2x3x14x14xf32, #tpu.memory_space<vmem>>) attributes {dimension_semantics = [], scalar_prefetch = 0 : i64, scratch_operands = 0 : i64, tpu.core_type = #tpu.core_type<tc>} {
    %c0 = arith.constant 0 : index
    %c0_0 = arith.constant 0 : index
    %0 = vector.load %arg0[%c0, %c0_0] : memref<8x3xf32, #tpu.memory_space<vmem>>, vector<8x3xf32>
    %c0_1 = arith.constant 0 : index
    %c64 = arith.constant 64 : index
    %1 = vector.load %arg2[%c0_1, %c64] : memref<152x128xf32, #tpu.memory_space<vmem>>, vector<3x4xf32>
    %c3 = arith.constant 3 : index
    %c64_2 = arith.constant 64 : index
    %2 = vector.load %arg2[%c3, %c64_2] : memref<152x128xf32, #tpu.memory_space<vmem>>, vector<1x4xf32>
    %3 = vector.extract_strided_slice %0 {offsets = [0, 0], sizes = [8, 1], strides = [1, 1]} : vector<8x3xf32> to vector<8x1xf32>
    %4 = vector.extract_strided_slice %1 {offsets = [0, 0], sizes = [1, 4], strides = [1, 1]} : vector<3x4xf32> to vector<1x4xf32>
    %5 = vector.broadcast %3 : vector<8x1xf32> to vector<8x4xf32>
    %6 = vector.broadcast %4 : vector<1x4xf32> to vector<8x4xf32>
    %7 = arith.mulf %5, %6 : vector<8x4xf32>
    %8 = vector.extract_strided_slice %0 {offsets = [0, 1], sizes = [8, 1], strides = [1, 1]} : vector<8x3xf32> to vector<8x1xf32>
    %9 = vector.extract_strided_slice %1 {offsets = [1, 0], sizes = [1, 4], strides = [1, 1]} : vector<3x4xf32> to vector<1x4xf32>
    %10 = vector.broadcast %8 : vector<8x1xf32> to vector<8x4xf32>
    %11 = vector.broadcast %9 : vector<1x4xf32> to vector<8x4xf32>
    %12 = arith.mulf %10, %11 : vector<8x4xf32>
    %13 = arith.addf %7, %12 : vector<8x4xf32>
    %14 = vector.extract_strided_slice %0 {offsets = [0, 2], sizes = [8, 1], strides = [1, 1]} : vector<8x3xf32> to vector<8x1xf32>
    %15 = vector.extract_strided_slice %1 {offsets = [2, 0], sizes = [1, 4], strides = [1, 1]} : vector<3x4xf32> to vector<1x4xf32>
    %16 = vector.broadcast %14 : vector<8x1xf32> to vector<8x4xf32>
    %17 = vector.broadcast %15 : vector<1x4xf32> to vector<8x4xf32>
    %18 = arith.mulf %16, %17 : vector<8x4xf32>
    %19 = arith.addf %13, %18 : vector<8x4xf32>
    %20 = vector.broadcast %2 : vector<1x4xf32> to vector<8x4xf32>
    %21 = arith.addf %19, %20 : vector<8x4xf32>
    %cst = arith.constant 0.000000e+00 : f32
    %22 = vector.broadcast %cst : f32 to vector<8x4xf32>
    %23 = arith.maximumf %21, %22 : vector<8x4xf32>
    %c0_3 = arith.constant 0 : index
    %c0_4 = arith.constant 0 : index
    %24 = vector.load %arg3[%c0_3, %c0_4] : memref<8x4xf32, #tpu.memory_space<vmem>>, vector<8x4xf32>
    tpu.vector_store %arg3[%c0_3, %c0_4], %23 {strides = array<i32>} : memref<8x4xf32, #tpu.memory_space<vmem>>, vector<8x4xf32>,
    %c0_5 = arith.constant 0 : index
    %c0_6 = arith.constant 0 : index
    %25 = vector.load %arg2[%c0_5, %c0_6] : memref<152x128xf32, #tpu.memory_space<vmem>>, vector<152x128xf32>
    %cst_7 = arith.constant 1.000000e+00 : f32
    %26 = vector.broadcast %cst_7 : f32 to vector<14x8xf32>
    %c0_8 = arith.constant 0 : index
    %c0_9 = arith.constant 0 : index
    %c0_10 = arith.constant 0 : index
    %c0_11 = arith.constant 0 : index
    %27 = vector.load %arg1[%c0_8, %c0_9, %c0_10, %c0_11] : memref<2x3x16x16xf32, #tpu.memory_space<vmem>>, vector<1x1x14x16xf32>
    %28 = vector.shape_cast %27 : vector<1x1x14x16xf32> to vector<14x16xf32>
    %c0_12 = arith.constant 0 : index
    %c0_13 = arith.constant 0 : index
    %c1 = arith.constant 1 : index
    %c0_14 = arith.constant 0 : index
    %29 = vector.load %arg1[%c0_12, %c0_13, %c1, %c0_14] : memref<2x3x16x16xf32, #tpu.memory_space<vmem>>, vector<1x1x14x16xf32>
    %30 = vector.shape_cast %29 : vector<1x1x14x16xf32> to vector<14x16xf32>
    %c0_15 = arith.constant 0 : index
    %c0_16 = arith.constant 0 : index
    %c2 = arith.constant 2 : index
    %c0_17 = arith.constant 0 : index
    %31 = vector.load %arg1[%c0_15, %c0_16, %c2, %c0_17] : memref<2x3x16x16xf32, #tpu.memory_space<vmem>>, vector<1x1x14x16xf32>
    %32 = vector.shape_cast %31 : vector<1x1x14x16xf32> to vector<14x16xf32>
    %c0_18 = arith.constant 0 : index
    %c1_19 = arith.constant 1 : index
    %c0_20 = arith.constant 0 : index
    %c0_21 = arith.constant 0 : index
    %33 = vector.load %arg1[%c0_18, %c1_19, %c0_20, %c0_21] : memref<2x3x16x16xf32, #tpu.memory_space<vmem>>, vector<1x1x14x16xf32>
    %34 = vector.shape_cast %33 : vector<1x1x14x16xf32> to vector<14x16xf32>
    %c0_22 = arith.constant 0 : index
    %c1_23 = arith.constant 1 : index
    %c1_24 = arith.constant 1 : index
    %c0_25 = arith.constant 0 : index
    %35 = vector.load %arg1[%c0_22, %c1_23, %c1_24, %c0_25] : memref<2x3x16x16xf32, #tpu.memory_space<vmem>>, vector<1x1x14x16xf32>
    %36 = vector.shape_cast %35 : vector<1x1x14x16xf32> to vector<14x16xf32>
    %c0_26 = arith.constant 0 : index
    %c1_27 = arith.constant 1 : index
    %c2_28 = arith.constant 2 : index
    %c0_29 = arith.constant 0 : index
    %37 = vector.load %arg1[%c0_26, %c1_27, %c2_28, %c0_29] : memref<2x3x16x16xf32, #tpu.memory_space<vmem>>, vector<1x1x14x16xf32>
    %38 = vector.shape_cast %37 : vector<1x1x14x16xf32> to vector<14x16xf32>
    %c0_30 = arith.constant 0 : index
    %c2_31 = arith.constant 2 : index
    %c0_32 = arith.constant 0 : index
    %c0_33 = arith.constant 0 : index
    %39 = vector.load %arg1[%c0_30, %c2_31, %c0_32, %c0_33] : memref<2x3x16x16xf32, #tpu.memory_space<vmem>>, vector<1x1x14x16xf32>
    %40 = vector.shape_cast %39 : vector<1x1x14x16xf32> to vector<14x16xf32>
    %c0_34 = arith.constant 0 : index
    %c2_35 = arith.constant 2 : index
    %c1_36 = arith.constant 1 : index
    %c0_37 = arith.constant 0 : index
    %41 = vector.load %arg1[%c0_34, %c2_35, %c1_36, %c0_37] : memref<2x3x16x16xf32, #tpu.memory_space<vmem>>, vector<1x1x14x16xf32>
    %42 = vector.shape_cast %41 : vector<1x1x14x16xf32> to vector<14x16xf32>
    %c0_38 = arith.constant 0 : index
    %c2_39 = arith.constant 2 : index
    %c2_40 = arith.constant 2 : index
    %c0_41 = arith.constant 0 : index
    %43 = vector.load %arg1[%c0_38, %c2_39, %c2_40, %c0_41] : memref<2x3x16x16xf32, #tpu.memory_space<vmem>>, vector<1x1x14x16xf32>
    %44 = vector.shape_cast %43 : vector<1x1x14x16xf32> to vector<14x16xf32>
    %45 = tpu.concatenate %28, %30, %32, %34, %36, %38, %40, %42, %44, %26 in 1 : vector<14x16xf32>, vector<14x16xf32>, vector<14x16xf32>, vector<14x16xf32>, vector<14x16xf32>, vector<14x16xf32>, vector<14x16xf32>, vector<14x16xf32>, vector<14x16xf32>, vector<14x8xf32> -> vector<14x152xf32>
    %cst_42 = arith.constant dense<0.000000e+00> : vector<14x128xf32>
    %46 = tpu.matmul %45, %25, %cst_42 {dimension_numbers = #tpu.dot_dimension_numbers<[1], [0], [0], [1], [0, 0, 1, 1], [], []>} : vector<14x152xf32>, vector<152x128xf32>, vector<14x128xf32> -> vector<14x128xf32>
    %cst_43 = arith.constant 0.000000e+00 : f32
    %47 = vector.broadcast %cst_43 : f32 to vector<14x128xf32>
    %48 = arith.maximumf %46, %47 : vector<14x128xf32>
    %49 = vector.extract_strided_slice %48 {offsets = [0, 0], sizes = [14, 14], strides = [1, 1]} : vector<14x128xf32> to vector<14x14xf32>
    %50 = vector.extract_strided_slice %48 {offsets = [0, 14], sizes = [14, 14], strides = [1, 1]} : vector<14x128xf32> to vector<14x14xf32>
    %51 = vector.extract_strided_slice %48 {offsets = [0, 28], sizes = [14, 14], strides = [1, 1]} : vector<14x128xf32> to vector<14x14xf32>
    %52 = vector.shape_cast %49 : vector<14x14xf32> to vector<1x14x14xf32>
    %53 = vector.shape_cast %50 : vector<14x14xf32> to vector<1x14x14xf32>
    %54 = vector.shape_cast %51 : vector<14x14xf32> to vector<1x14x14xf32>
    %55 = tpu.concatenate %52, %53, %54 in 0 : vector<1x14x14xf32>, vector<1x14x14xf32>, vector<1x14x14xf32> -> vector<3x14x14xf32>
    %c0_44 = arith.constant 0 : index
    %c0_45 = arith.constant 0 : index
    %c0_46 = arith.constant 0 : index
    %c0_47 = arith.constant 0 : index
    %56 = vector.load %arg4[%c0_44, %c0_45, %c0_46, %c0_47] : memref<2x3x14x14xf32, #tpu.memory_space<vmem>>, vector<1x3x14x14xf32>
    %57 = vector.shape_cast %56 : vector<1x3x14x14xf32> to vector<3x14x14xf32>
    %58 = vector.shape_cast %55 : vector<3x14x14xf32> to vector<1x3x14x14xf32>
    tpu.vector_store %arg4[%c0_44, %c0_45, %c0_46, %c0_47], %58 {strides = array<i32>} : memref<2x3x14x14xf32, #tpu.memory_space<vmem>>, vector<1x3x14x14xf32>,
    %c1_48 = arith.constant 1 : index
    %c0_49 = arith.constant 0 : index
    %c0_50 = arith.constant 0 : index
    %c0_51 = arith.constant 0 : index
    %59 = vector.load %arg1[%c1_48, %c0_49, %c0_50, %c0_51] : memref<2x3x16x16xf32, #tpu.memory_space<vmem>>, vector<1x1x14x16xf32>
    %60 = vector.shape_cast %59 : vector<1x1x14x16xf32> to vector<14x16xf32>
    %c1_52 = arith.constant 1 : index
    %c0_53 = arith.constant 0 : index
    %c1_54 = arith.constant 1 : index
    %c0_55 = arith.constant 0 : index
    %61 = vector.load %arg1[%c1_52, %c0_53, %c1_54, %c0_55] : memref<2x3x16x16xf32, #tpu.memory_space<vmem>>, vector<1x1x14x16xf32>
    %62 = vector.shape_cast %61 : vector<1x1x14x16xf32> to vector<14x16xf32>
    %c1_56 = arith.constant 1 : index
    %c0_57 = arith.constant 0 : index
    %c2_58 = arith.constant 2 : index
    %c0_59 = arith.constant 0 : index
    %63 = vector.load %arg1[%c1_56, %c0_57, %c2_58, %c0_59] : memref<2x3x16x16xf32, #tpu.memory_space<vmem>>, vector<1x1x14x16xf32>
    %64 = vector.shape_cast %63 : vector<1x1x14x16xf32> to vector<14x16xf32>
    %c1_60 = arith.constant 1 : index
    %c1_61 = arith.constant 1 : index
    %c0_62 = arith.constant 0 : index
    %c0_63 = arith.constant 0 : index
    %65 = vector.load %arg1[%c1_60, %c1_61, %c0_62, %c0_63] : memref<2x3x16x16xf32, #tpu.memory_space<vmem>>, vector<1x1x14x16xf32>
    %66 = vector.shape_cast %65 : vector<1x1x14x16xf32> to vector<14x16xf32>
    %c1_64 = arith.constant 1 : index
    %c1_65 = arith.constant 1 : index
    %c1_66 = arith.constant 1 : index
    %c0_67 = arith.constant 0 : index
    %67 = vector.load %arg1[%c1_64, %c1_65, %c1_66, %c0_67] : memref<2x3x16x16xf32, #tpu.memory_space<vmem>>, vector<1x1x14x16xf32>
    %68 = vector.shape_cast %67 : vector<1x1x14x16xf32> to vector<14x16xf32>
    %c1_68 = arith.constant 1 : index
    %c1_69 = arith.constant 1 : index
    %c2_70 = arith.constant 2 : index
    %c0_71 = arith.constant 0 : index
    %69 = vector.load %arg1[%c1_68, %c1_69, %c2_70, %c0_71] : memref<2x3x16x16xf32, #tpu.memory_space<vmem>>, vector<1x1x14x16xf32>
    %70 = vector.shape_cast %69 : vector<1x1x14x16xf32> to vector<14x16xf32>
    %c1_72 = arith.constant 1 : index
    %c2_73 = arith.constant 2 : index
    %c0_74 = arith.constant 0 : index
    %c0_75 = arith.constant 0 : index
    %71 = vector.load %arg1[%c1_72, %c2_73, %c0_74, %c0_75] : memref<2x3x16x16xf32, #tpu.memory_space<vmem>>, vector<1x1x14x16xf32>
    %72 = vector.shape_cast %71 : vector<1x1x14x16xf32> to vector<14x16xf32>
    %c1_76 = arith.constant 1 : index
    %c2_77 = arith.constant 2 : index
    %c1_78 = arith.constant 1 : index
    %c0_79 = arith.constant 0 : index
    %73 = vector.load %arg1[%c1_76, %c2_77, %c1_78, %c0_79] : memref<2x3x16x16xf32, #tpu.memory_space<vmem>>, vector<1x1x14x16xf32>
    %74 = vector.shape_cast %73 : vector<1x1x14x16xf32> to vector<14x16xf32>
    %c1_80 = arith.constant 1 : index
    %c2_81 = arith.constant 2 : index
    %c2_82 = arith.constant 2 : index
    %c0_83 = arith.constant 0 : index
    %75 = vector.load %arg1[%c1_80, %c2_81, %c2_82, %c0_83] : memref<2x3x16x16xf32, #tpu.memory_space<vmem>>, vector<1x1x14x16xf32>
    %76 = vector.shape_cast %75 : vector<1x1x14x16xf32> to vector<14x16xf32>
    %77 = tpu.concatenate %60, %62, %64, %66, %68, %70, %72, %74, %76, %26 in 1 : vector<14x16xf32>, vector<14x16xf32>, vector<14x16xf32>, vector<14x16xf32>, vector<14x16xf32>, vector<14x16xf32>, vector<14x16xf32>, vector<14x16xf32>, vector<14x16xf32>, vector<14x8xf32> -> vector<14x152xf32>
    %cst_84 = arith.constant dense<0.000000e+00> : vector<14x128xf32>
    %78 = tpu.matmul %77, %25, %cst_84 {dimension_numbers = #tpu.dot_dimension_numbers<[1], [0], [0], [1], [0, 0, 1, 1], [], []>} : vector<14x152xf32>, vector<152x128xf32>, vector<14x128xf32> -> vector<14x128xf32>
    %cst_85 = arith.constant 0.000000e+00 : f32
    %79 = vector.broadcast %cst_85 : f32 to vector<14x128xf32>
    %80 = arith.maximumf %78, %79 : vector<14x128xf32>
    %81 = vector.extract_strided_slice %80 {offsets = [0, 0], sizes = [14, 14], strides = [1, 1]} : vector<14x128xf32> to vector<14x14xf32>
    %82 = vector.extract_strided_slice %80 {offsets = [0, 14], sizes = [14, 14], strides = [1, 1]} : vector<14x128xf32> to vector<14x14xf32>
    %83 = vector.extract_strided_slice %80 {offsets = [0, 28], sizes = [14, 14], strides = [1, 1]} : vector<14x128xf32> to vector<14x14xf32>
    %84 = vector.shape_cast %81 : vector<14x14xf32> to vector<1x14x14xf32>
    %85 = vector.shape_cast %82 : vector<14x14xf32> to vector<1x14x14xf32>
    %86 = vector.shape_cast %83 : vector<14x14xf32> to vector<1x14x14xf32>
    %87 = tpu.concatenate %84, %85, %86 in 0 : vector<1x14x14xf32>, vector<1x14x14xf32>, vector<1x14x14xf32> -> vector<3x14x14xf32>
    %c1_86 = arith.constant 1 : index
    %c0_87 = arith.constant 0 : index
    %c0_88 = arith.constant 0 : index
    %c0_89 = arith.constant 0 : index
    %88 = vector.load %arg4[%c1_86, %c0_87, %c0_88, %c0_89] : memref<2x3x14x14xf32, #tpu.memory_space<vmem>>, vector<1x3x14x14xf32>
    %89 = vector.shape_cast %88 : vector<1x3x14x14xf32> to vector<3x14x14xf32>
    %90 = vector.shape_cast %87 : vector<3x14x14xf32> to vector<1x3x14x14xf32>
    tpu.vector_store %arg4[%c1_86, %c0_87, %c0_88, %c0_89], %90 {strides = array<i32>} : memref<2x3x14x14xf32, #tpu.memory_space<vmem>>, vector<1x3x14x14xf32>,
    return
  }
}

</mosaic_0001>

<bundles_post_ra>
// kernel: run_pipelines.1
= control target key start
LH: loop header
LB: loop body
LE: loop exit
PB: predicated region body
PF: predicated region fallthrough
CT: control target
= control target key end

     0   :  { %10 = vsyncpa [#allocation3], 0  ;;  %s853_s0 = inlined_call_operand.vmem [shape: f32[8,3], index: 0, kind: input, shape index: {}]   ;;  %s854_s1 = inlined_call_operand.hbm [shape: f32[2,3,16,16], index: 1, kind: input, shape index: {}]   ;;  %s855_s2 = inlined_call_operand.hbm [shape: f32[152,128], index: 2, kind: input, shape index: {}]   ;;  %s856_s3 = inlined_call_operand.vmem [shape: f32[8,4], index: 3, kind: output, shape index: {0}]   ;;  %s857_s4 = inlined_call_operand.vmem [shape: f32[2,3,14,14], index: 4, kind: output, shape index: {1}]  }
   0x1   :  { %11 = vsyncpa [#allocation5], 0  ;;  %s666_s15 = smov [#allocation2]  }
   0x2   :  { %s19_s16 = sshll.u32 %s666_s15, 4  ;;  %s20_s16 = int_to_ptr.vmem [resolvable:$true] %s19_s16 }
   0x3   :  { %s630_s17 = scalar_lea.vmem %s20_s16, 1536  ;;  %p635_p1 = scmp.lt.s32.totalorder %s20_s16, %s20_s16 }
   0x4   :  { %p631_p0 = scmp.ne.s32.totalorder %s20_s16, %s630_s17  ;;  %p636_p2 = scmp.lt.s32.totalorder %s630_s17, %s630_s17 }
   0x6   :  { %p637_p3 = por %p636_p2, %p635_p1 }
   0x8   :  { %p638_p4 = pnand %p637_p3, %p631_p0 }
   0xa   :  { %641 = shalt.err (!%p638_p4)
}
   0xb   :  { %s667_s18 = smov 128   ;;  %s668_s19 = smov 8  }
   0xc   :  { %25 = dma.hbm_to_vmem [thread:$0]  %s854_s1, 1536, %s20_s16, [#allocation3], %s667_s18, %s667_s18, %s668_s19  }
   0xd   :  { %s669_s22 = smov [#allocation4]  }
   0xe   :  { %s31_s23 = sshll.u32 %s669_s22, 4  ;;  %s32_s23 = int_to_ptr.vmem [resolvable:$true] %s31_s23 }
   0xf   :  { %s650_s24 = scalar_lea.vmem %s32_s23, 2432  ;;  %p655_p6 = scmp.lt.s32.totalorder %s32_s23, %s32_s23 }
  0x10   :  { %p651_p5 = scmp.ne.s32.totalorder %s32_s23, %s650_s24  ;;  %p656_p7 = scmp.lt.s32.totalorder %s650_s24, %s650_s24 }
  0x12   :  { %p657_p8 = por %p656_p7, %p655_p6 }
  0x14   :  { %p658_p9 = pnand %p657_p8, %p651_p5 }
  0x16   :  { %661 = shalt.err (!%p658_p9)
}
  0x17   :  { %37 = dma.hbm_to_vmem [thread:$0]  %s855_s2, 2432, %s32_s23, [#allocation5], %s667_s18, %s667_s18, %s668_s19  }
  0x18   :  { %662 = dma.done.wait [#allocation3], 1536  }
  0x19   :  { %663 = vsyncadd [#allocation3], 4294965760 }
  0x1a   :  { %664 = dma.done.wait [#allocation5], 2432  }
  0x1b   :  { %665 = vsyncadd [#allocation5], 4294964864  ;;  %v670_v0 = vmov 0.0   ;;  %v115_v1 = vld [vmem:[#allocation2 + $0x10] sm:$0xff]  ;;  %v321_v2 = vld [vmem:[#allocation2 + $0x40] sm:$0xff]  ;;  %s671_s1 = smov 48  }
  0x1c   :  { %214 = vmatprep.subr.mxu0 %v670_v0  ;;  %412 = vmatprep.subr.mxu1 %v670_v0  ;;  %v110_v3 = vld [vmem:[#allocation2 + $0x1] sm:$0xff]  ;;  %v558_v4 = vpack.i.bf16 %v321_v2, %v115_v1  ;;  %v316_v5 = vld [vmem:[#allocation2 + $0x31] sm:$0xff]  ;;  %s672_s2 = smov 16   ;;  %v111_v15 = vld [vmem:[#allocation2 + $0x9] sm:$0x3f]  ;;  %s673_s27 = smov 64  }
  0x1d   :  { %v117_v6 = vld [vmem:[#allocation2 + $0x11] sm:$0xff]  ;;  %v323_v7 = vld [vmem:[#allocation2 + $0x41] sm:$0xff]  ;;  %v548_v8 = vpack.i.bf16 %v316_v5, %v110_v3  ;;  %v317_v16 = vld [vmem:[#allocation2 + $0x39] sm:$0x3f]  ;;  %s674_s28 = smov 32   ;;  %s675_s29 = smov 80  }
  0x1e   :  { %v112_v9 = vld [vmem:[#allocation2 + $0x2] sm:$0xff]  ;;  %v318_v10 = vld [vmem:[#allocation2 + $0x32] sm:$0xff]  ;;  %559 = vrot.lane.b32.xlu1 %v558_v4, %s671_s1  ;;  %v563_v11 = vpack.i.bf16 %v323_v7, %v117_v6  ;;  %v568_v18 = vpack.i.bf16 %v317_v16, %v111_v15  ;;  %v113_v21 = vld [vmem:[#allocation2 + $0xa] sm:$0x3f]  ;;  %s676_s30 = smov 96   ;;  %s677_s5 = smov 112  }
  0x1f   :  { %549 = vrot.lane.b32.xlu0 %v548_v8, %s672_s2  ;;  %v553_v12 = vpack.i.bf16 %v318_v10, %v112_v9  ;;  %v119_v13 = vld [vmem:[#allocation2 + $0x12] sm:$0xff]  ;;  %v325_v14 = vld [vmem:[#allocation2 + $0x42] sm:$0xff]  ;;  %v319_v22 = vld [vmem:[#allocation2 + $0x3a] sm:$0x3f]  ;;  %vm184_vm0 = vcmask 130048   ;;  %vm207_vm1 = vcmask 195584  }
  0x20   :  { %v573_v17 = vpack.i.bf16 %v325_v14, %v119_v13  ;;  %v122_v19 = vld [vmem:[#allocation2 + $0x20] sm:$0xff]  ;;  %v328_v20 = vld [vmem:[#allocation2 + $0x50] sm:$0xff]  ;;  %v104_v23 = vld [vmem:[#allocation4 + $0x78] sm:$0xff]  ;;  %v578_v26 = vpack.i.bf16 %v319_v22, %v113_v21  ;;  %v678_v4 = vmov 1   ;;  %v679_v5 = vmov 0   ;;  %s681_s13 = smov 114  }
  0x21   :  { %215 = vmatpush1.msra.mxu0 %v104_v23  ;;  %413 = vmatpush1.msra.mxu1 %v104_v23  ;;  %v103_v24 = vld [vmem:[#allocation4 + $0x70] sm:$0xff]  ;;  %v583_v25 = vpack.i.bf16 %v328_v20, %v122_v19  ;;  %v124_v27 = vld [vmem:[#allocation2 + $0x21] sm:$0xff]  ;;  %v116_v30 = vld [vmem:[#allocation2 + $0x18] sm:$0x3f]  ;;  %v680_v6 = vmov 2   ;;  %vm187_vm2 = vcmask 261120  }
  0x22   :  { %564 = vrot.lane.b32.xlu1 %v563_v11, %s673_s27  ;;  %216 = vmatprep.subr.mxu0 %v670_v0  ;;  %v330_v28 = vld [vmem:[#allocation2 + $0x51] sm:$0xff]  ;;  %v102_v29 = vld [vmem:[#allocation4 + $0x68] sm:$0xff]  ;;  %v101_v33 = vld [vmem:[#allocation4 + $0x60] sm:$0xff]  ;;  %vm190_vm3 = vcmask 392192   ;;  %vm193_vm4 = vcmask 523264   ;;  %vm196_vm5 = vcmask 654336  }
  0x23   :  { %554 = vrot.lane.b32.xlu0 %v553_v12, %s674_s28  ;;  %414 = vmatprep.subr.mxu1 %v670_v0  ;;  %v322_v31 = vld [vmem:[#allocation2 + $0x48] sm:$0x3f]  ;;  %v593_v32 = vpack.i.bf16 %v330_v28, %v124_v27  ;;  %v120_v35 = vld [vmem:[#allocation2 + $0x1a] sm:$0x3f]  ;;  %v99_v44 = vld [vmem:[#allocation4 + $0x50] sm:$0xff]  ;;  %vm199_vm6 = vcmask 785408  }
  0x24   :  { %217 = vmatpush1.msra.mxu0 %v103_v24  ;;  %415 = vmatpush1.msra.mxu1 %v103_v24  ;;  %v588_v34 = vpack.i.bf16 %v322_v31, %v116_v30  ;;  %v326_v36 = vld [vmem:[#allocation2 + $0x4a] sm:$0x3f]  ;;  %v118_v37 = vld [vmem:[#allocation2 + $0x19] sm:$0x3f]  ;;  %v97_v50 = vld [vmem:[#allocation4 + $0x40] sm:$0xff]  ;;  %vm202_vm7 = vcmask 916480  }
  0x25   :  { %218 = vmatprep.subr.mxu0 %v670_v0  ;;  %416 = vmatprep.subr.mxu1 %v670_v0  ;;  %v324_v38 = vld [vmem:[#allocation2 + $0x49] sm:$0x3f]  ;;  %v100_v39 = vld [vmem:[#allocation4 + $0x58] sm:$0xff]  ;;  %v603_v40 = vpack.i.bf16 %v326_v36, %v120_v35  ;;  %v95_v52 = vld [vmem:[#allocation4 + $0x30] sm:$0xff]  ;;  %vm87_vm8 = vcmask 31744   ;;  %vm305_vm9 = vcmask 113664  }
  0x26   :  { %574 = vrot.lane.b32.xlu1 %v573_v17, %s675_s29  ;;  %219 = vmatpush1.msra.mxu0 %v102_v29  ;;  %v598_v41 = vpack.i.bf16 %v324_v38, %v118_v37  ;;  %v125_v42 = vld [vmem:[#allocation2 + $0x29] sm:$0x3f]  ;;  %v331_v43 = vld [vmem:[#allocation2 + $0x59] sm:$0x3f]  ;;  %v93_v54 = vld [vmem:[#allocation4 + $0x20] sm:$0xff]  ;;  %vm307_vm10 = vcmask 111616  }
  0x27   :  { %569 = vrot.lane.b32.xlu0 %v568_v18, %s672_s2  ;;  %417 = vmatpush1.msra.mxu1 %v102_v29  ;;  %v123_v45 = vld [vmem:[#allocation2 + $0x28] sm:$0x3f]  ;;  %v329_v46 = vld [vmem:[#allocation2 + $0x58] sm:$0x3f]  ;;  %v613_v47 = vpack.i.bf16 %v331_v43, %v125_v42  ;;  %v91_v56 = vld [vmem:[#allocation4 + $0x10] sm:$0xff] }
  0x28   :  { %220 = vmatprep.subr.mxu0 %v670_v0  ;;  %418 = vmatprep.subr.mxu1 %v670_v0  ;;  %v98_v48 = vld [vmem:[#allocation4 + $0x48] sm:$0xff]  ;;  %v608_v49 = vpack.i.bf16 %v329_v46, %v123_v45  ;;  %v96_v51 = vld [vmem:[#allocation4 + $0x38] sm:$0xff]  ;;  %v89_v58 = vld [vmem:[#allocation4] sm:$0xff] }
  0x29   :  { %221 = vmatpush1.msra.mxu0 %v101_v33  ;;  %419 = vmatpush1.msra.mxu1 %v101_v33  ;;  %v94_v53 = vld [vmem:[#allocation4 + $0x28] sm:$0xff]  ;;  %v92_v55 = vld [vmem:[#allocation4 + $0x18] sm:$0xff]  ;;  %v107_v59 = vld [vmem:[#allocation4 + $0x90] sm:$0xff] }
  0x2a   :  { %584 = vrot.lane.b32.xlu1 %v583_v25, %s676_s30  ;;  %222 = vmatprep.subr.mxu0 %v670_v0  ;;  %v90_v57 = vld [vmem:[#allocation4 + $0x8] sm:$0xff]  ;;  %v332_v62 = vld [vmem:[#allocation2 + $0x52] sm:$0xff]  ;;  %v105_v63 = vld [vmem:[#allocation4 + $0x80] sm:$0xff] }
  0x2b   :  { %579 = vrot.lane.b32.xlu0 %v578_v26, %s674_s28  ;;  %420 = vmatprep.subr.mxu1 %v670_v0  ;;  %v126_v60 = vld [vmem:[#allocation2 + $0x22] sm:$0xff]  ;;  %v404_v2 = vsel %vm184_vm0, %v332_v62, 1.0  ;;  %v314_v10 = vld [vmem:[#allocation2 + $0x30] sm:$0xff]  ;;  %v333_v33 = vld [vmem:[#allocation2 + $0x5a] sm:$0x3f] }
  0x2c   :  { %223 = vmatpush1.msra.mxu0 %v100_v39  ;;  %421 = vmatpush1.msra.mxu1 %v100_v39  ;;  %v106_v61 = vld [vmem:[#allocation4 + $0x88] sm:$0xff]  ;;  %v205_v1 = vsel %vm184_vm0, %v126_v60, 1.0  ;;  %v44_v3 = vld [vmem:[%s853_s0] sm:$0xff]  ;;  %v405_v42 = vsel %vm184_vm0, %v333_v33, 1.0 }
  0x2d   :  { %224 = vmatprep.subr.mxu0 %v670_v0  ;;  %422 = vmatprep.subr.mxu1 %v670_v0  ;;  %v108_v11 = vld [vmem:[#allocation2] sm:$0xff] }
  0x2e   :  { %594 = vrot.lane.b32.xlu1 %v593_v32, %s677_s5  ;;  %225 = vmatpush1.msra.mxu0 %v99_v44  ;;  %v127_v32 = vld [vmem:[#allocation2 + $0x2a] sm:$0x3f] }
  0x2f   :  { %589 = vrot.lane.b32.xlu0 %v588_v34, %s671_s1  ;;  %423 = vmatpush1.msra.mxu1 %v99_v44 }
  0x30   :  { %226 = vmatprep.subr.mxu0 %v670_v0  ;;  %424 = vmatprep.subr.mxu1 %v670_v0 }
  0x31   :  { %227 = vmatpush1.msra.mxu0 %v98_v48  ;;  %425 = vmatpush1.msra.mxu1 %v98_v48  ;;  %v315_v48 = vld [vmem:[#allocation2 + $0x38] sm:$0x3f] }
  0x32   :  { %604 = vrot.lane.b32.xlu1 %v603_v40, %s675_s29  ;;  %228 = vmatprep.subr.mxu0 %v670_v0 }
  0x33   :  { %599 = vrot.lane.b32.xlu0 %v598_v41, %s673_s27  ;;  %426 = vmatprep.subr.mxu1 %v670_v0  ;;  %v206_v41 = vsel %vm184_vm0, %v127_v32, 1.0 }
  0x34   :  { %229 = vmatpush1.msra.mxu0 %v97_v50  ;;  %427 = vmatpush1.msra.mxu1 %v97_v50 }
  0x35   :  { %230 = vmatprep.subr.mxu0 %v670_v0  ;;  %428 = vmatprep.subr.mxu1 %v670_v0 }
  0x36   :  { %614 = vrot.lane.b32.xlu1 %v613_v47, %s677_s5  ;;  %231 = vmatpush1.msra.mxu0 %v96_v51 }
  0x37   :  { %609 = vrot.lane.b32.xlu0 %v608_v49, %s676_s30  ;;  %429 = vmatpush1.msra.mxu1 %v96_v51  ;;  %v109_v49 = vld [vmem:[#allocation2 + $0x8] sm:$0x3f] }
  0x38   :  { %232 = vmatprep.subr.mxu0 %v670_v0  ;;  %430 = vmatprep.subr.mxu1 %v670_v0 }
  0x39   :  { %233 = vmatpush1.msra.mxu0 %v95_v52  ;;  %431 = vmatpush1.msra.mxu1 %v95_v52 }
  0x3a   :  { %234 = vmatprep.subr.mxu0 %v670_v0  ;;  %432 = vmatprep.subr.mxu1 %v670_v0 }
  0x3b   :  { %235 = vmatpush1.msra.mxu0 %v94_v53  ;;  %433 = vmatpush1.msra.mxu1 %v94_v53 }
  0x3c   :  { %236 = vmatprep.subr.mxu0 %v670_v0  ;;  %434 = vmatprep.subr.mxu1 %v670_v0 }
  0x3d   :  { %237 = vmatpush1.msra.mxu0 %v93_v54  ;;  %435 = vmatpush1.msra.mxu1 %v93_v54 }
  0x3e   :  { %238 = vmatprep.subr.mxu0 %v670_v0  ;;  %436 = vmatprep.subr.mxu1 %v670_v0 }
  0x3f   :  { %239 = vmatpush1.msra.mxu0 %v92_v55  ;;  %437 = vmatpush1.msra.mxu1 %v92_v55 }
  0x40   :  { %240 = vmatprep.subr.mxu0 %v670_v0  ;;  %438 = vmatprep.subr.mxu1 %v670_v0 }
  0x41   :  { %241 = vmatpush1.msra.mxu0 %v91_v56  ;;  %439 = vmatpush1.msra.mxu1 %v91_v56 }
  0x42   :  { %242 = vmatprep.subr.mxu0 %v670_v0  ;;  %440 = vmatprep.subr.mxu1 %v670_v0 }
  0x43   :  { %243 = vmatpush1.msra.mxu0 %v90_v57  ;;  %441 = vmatpush1.msra.mxu1 %v90_v57 }
  0x44   :  { %244 = vmatprep.subr.mxu0 %v670_v0  ;;  %442 = vmatprep.subr.mxu1 %v670_v0 }
  0x45   :  { %245 = vmatpush1.msra.mxu0 %v89_v58  ;;  %443 = vmatpush1.msra.mxu1 %v89_v58 }
  0x46   :  { %272 = vmatprep.subr.mxu0 %v670_v0  ;;  %470 = vmatprep.subr.mxu1 %v670_v0 }
  0x47   :  { %273 = vmatpush2.msra.mxu0 %v107_v59  ;;  %471 = vmatpush2.msra.mxu1 %v107_v59 }
  0x48   :  { %274 = vmatprep.subr.mxu0 %v670_v0  ;;  %472 = vmatprep.subr.mxu1 %v670_v0 }
  0x49   :  { %275 = vmatpush2.msra.mxu0 %v106_v61  ;;  %473 = vmatpush2.msra.mxu1 %v106_v61 }
  0x4a   :  { %276 = vmatprep.subr.mxu0 %v670_v0  ;;  %474 = vmatprep.subr.mxu1 %v670_v0 }
  0x4b   :  { %277 = vmatpush2.msra.mxu0 %v105_v63  ;;  %521 = vmatprep.mubr.msk.f32.mxu0 %vm207_vm1, %v205_v1 }
  0x4c   :  { %475 = vmatpush2.msra.mxu1 %v105_v63  ;;  %523 = vmatprep.mubr.msk.f32.mxu1 %vm207_vm1, %v404_v2 }
  0x4d   :  { %619 = vset.pattern.permute.xlu1 %v678_v4  ;;  %618 = vset.pattern.permute.xlu0 %v679_v5 }
  0x4e   :  { %58 = vperm.xlu1 %619, %v44_v3   ;;  %49 = vperm.xlu0 %618, %v44_v3  }
  0x52   :  { %620 = vset.pattern.permute.xlu1 %v680_v6  ;;  %621 = vset.pattern.permute.xlu0 %v680_v6 }
  0x53   :  { %68 = vperm.xlu1 %620, %v44_v3  }
  0x90   :  { %v560_v0 = vpop.permute.xlu1 %559 }
  0x91   :  { %v550_v7 = vpop.permute.xlu0 %549  ;;  %v562_v21 = vunpack.i.h.bf16 %v560_v0  ;;  %v561_v22 = vunpack.i.l.bf16 %v560_v0 }
  0x92   :  { %v552_v8 = vunpack.i.h.bf16 %v550_v7  ;;  %v551_v9 = vunpack.i.l.bf16 %v550_v7 }
  0x94   :  { %v565_v12 = vpop.permute.xlu1 %564  ;;  %v390_v16 = vsel %vm184_vm0, %v314_v10, %v552_v8  ;;  %v185_v17 = vsel %vm184_vm0, %v108_v11, %v551_v9 }
  0x95   :  { %v555_v13 = vpop.permute.xlu0 %554  ;;  %v567_v24 = vunpack.i.h.bf16 %v565_v12  ;;  %v566_v25 = vunpack.i.l.bf16 %v565_v12 }
  0x96   :  { %v557_v14 = vunpack.i.h.bf16 %v555_v13  ;;  %v556_v15 = vunpack.i.l.bf16 %v555_v13 }
  0x98   :  { %v188_v18 = vsel %vm187_vm2, %v185_v17, %v556_v15  ;;  %v392_v19 = vsel %vm187_vm2, %v390_v16, %v557_v14  ;;  %v575_v20 = vpop.permute.xlu1 %574 }
  0x99   :  { %v570_v23 = vpop.permute.xlu0 %569  ;;  %v191_v26 = vsel %vm190_vm3, %v188_v18, %v561_v22  ;;  %v394_v27 = vsel %vm190_vm3, %v392_v19, %v562_v21  ;;  %v577_v29 = vunpack.i.h.bf16 %v575_v20  ;;  %v576_v30 = vunpack.i.l.bf16 %v575_v20 }
  0x9a   :  { %v194_v36 = vsel %vm193_vm4, %v191_v26, %v566_v25  ;;  %v396_v37 = vsel %vm193_vm4, %v394_v27, %v567_v24  ;;  %v572_v38 = vunpack.i.h.bf16 %v570_v23  ;;  %v571_v39 = vunpack.i.l.bf16 %v570_v23  ;;  %v45_v24 = vld [vmem:[#allocation4] sm:$0x7] }
  0x9b   :  { %v197_v46 = vsel %vm196_vm5, %v194_v36, %v576_v30  ;;  %v398_v47 = vsel %vm196_vm5, %v396_v37, %v577_v29  ;;  %v52_v20 = vlaneseq  ;;  %v520_v37 = vld [vmem:[#allocation4 + $0x3] ss:$0 sm:$0xff] }
  0x9c   :  { %v585_v28 = vpop.permute.xlu1 %584  ;;  %v391_v59 = vsel %vm184_vm0, %v315_v48, %v572_v38  ;;  %v186_v60 = vsel %vm184_vm0, %v109_v49, %v571_v39 }
  0x9d   :  { %v580_v31 = vpop.permute.xlu0 %579  ;;  %v587_v34 = vunpack.i.h.bf16 %v585_v28  ;;  %v586_v35 = vunpack.i.l.bf16 %v585_v28  ;;  %v53_v21 = vshrl.u32 %v52_v20, 7 }
  0x9e   :  { %v582_v50 = vunpack.i.h.bf16 %v580_v31  ;;  %v581_v51 = vunpack.i.l.bf16 %v580_v31 }
  0x9f   :  { %v200_v52 = vsel %vm199_vm6, %v197_v46, %v586_v35  ;;  %v400_v53 = vsel %vm199_vm6, %v398_v47, %v587_v34  ;;  %v63_v22 = vsub.s32 1, %v53_v21  ;;  %v54_v23 = vsub.s32 0, %v53_v21 }
  0xa0   :  { %v595_v40 = vpop.permute.xlu1 %594  ;;  %v189_v62 = vsel %vm187_vm2, %v186_v60, %v581_v51  ;;  %v393_v63 = vsel %vm187_vm2, %v391_v59, %v582_v50  ;;  %v73_v28 = vsub.s32 2, %v53_v21 }
  0xa1   :  { %v597_v43 = vunpack.i.h.bf16 %v595_v40  ;;  %v596_v44 = vunpack.i.l.bf16 %v595_v40  ;;  %v590_v45 = vpop.permute.xlu0 %589  ;;  %v64_v26 = vrot.slane %v45_v24, %v63_v22  ;;  %v55_v27 = vrot.slane %v45_v24, %v54_v23 }
  0xa2   :  { %v592_v54 = vunpack.i.h.bf16 %v590_v45  ;;  %v591_v55 = vunpack.i.l.bf16 %v590_v45  ;;  %v74_v32 = vrot.slane %v45_v24, %v73_v28 }
  0xa3   :  { %v203_v56 = vsel %vm202_vm7, %v200_v52, %v596_v44  ;;  %v402_v57 = vsel %vm202_vm7, %v400_v53, %v597_v43 }
  0xa4   :  { %279 = vmatmul.mubr.f32.vlgmr.msra.gmra.mxu0 %v203_v56  ;;  %477 = vmatmul.mubr.f32.vlgmr.msra.gmra.mxu1 %v402_v57  ;;  %v605_v58 = vpop.permute.xlu1 %604  ;;  %v192_v3 = vsel %vm190_vm3, %v189_v62, %v591_v55  ;;  %v395_v4 = vsel %vm190_vm3, %v393_v63, %v592_v54 }
  0xa5   :  { %v600_v61 = vpop.permute.xlu0 %599  ;;  %522 = vmatprep.mubr.msk.f32.mxu0 %vm207_vm1, %v206_v41  ;;  %524 = vmatprep.mubr.msk.f32.mxu1 %vm207_vm1, %v405_v42  ;;  %v607_v5 = vunpack.i.h.bf16 %v605_v58  ;;  %v606_v6 = vunpack.i.l.bf16 %v605_v58 }
  0xa6   :  { %v602_v1 = vunpack.i.h.bf16 %v600_v61  ;;  %v601_v2 = vunpack.i.l.bf16 %v600_v61 }
  0xa8   :  { %v195_v0 = vsel %vm193_vm4, %v192_v3, %v601_v2  ;;  %v397_v7 = vsel %vm193_vm4, %v395_v4, %v602_v1  ;;  %v615_v8 = vpop.permute.xlu1 %614 }
  0xa9   :  { %v610_v9 = vpop.permute.xlu0 %609  ;;  %v617_v10 = vunpack.i.h.bf16 %v615_v8  ;;  %v616_v11 = vunpack.i.l.bf16 %v615_v8  ;;  %v198_v14 = vsel %vm196_vm5, %v195_v0, %v606_v6  ;;  %v399_v15 = vsel %vm196_vm5, %v397_v7, %v607_v5 }
  0xaa   :  { %v612_v12 = vunpack.i.h.bf16 %v610_v9  ;;  %v611_v13 = vunpack.i.l.bf16 %v610_v9 }
  0xac   :  { %v201_v16 = vsel %vm199_vm6, %v198_v14, %v611_v13  ;;  %v401_v17 = vsel %vm199_vm6, %v399_v15, %v612_v12 }
  0xad   :  { %v204_v18 = vsel %vm202_vm7, %v201_v16, %v616_v11  ;;  %v403_v19 = vsel %vm202_vm7, %v401_v17, %v617_v10 }
  0xae   :  { %284 = vmatmul.mubr.f32.gmra.mxu0 %v204_v18  ;;  %482 = vmatmul.mubr.f32.gmra.mxu1 %v403_v19 }
  0xc9   :  { %v59_v25 = vpop.permute.xlu1 %58  ;;  %v50_v29 = vpop.permute.xlu0 %49 }
  0xca   :  { %v65_v30 = vmul.f32 %v64_v26, %v59_v25  ;;  %v56_v31 = vmul.f32 %v55_v27, %v50_v29 }
  0xcc   :  { %v66_v34 = vadd.f32 %v65_v30, %v56_v31 }
  0xce   :  { %v69_v33 = vpop.permute.xlu1 %68 }
  0xcf   :  { %v75_v35 = vmul.f32 %v74_v32, %v69_v33 }
  0xd1   :  { %v76_v36 = vadd.f32 %v75_v35, %v66_v34 }
  0xd3   :  { %v81_v38 = vadd.f32 %v520_v37, %v76_v36 }
  0xd5   :  { %v82_v39 = vmax.f32 %v81_v38, 0.0 }
  0xd7   :  { %84 = vrot.lane.b32.xlu0 %v82_v39, %s673_s27 }
 0x149   :  { %v85_v40 = vpop.permute.xlu0 %84 }
 0x14a   :  { %88 = vst.msk [vmem:[%s856_s3] sm:$0xff] %vm87_vm8, %v85_v40  ;;  %s682_s3 = smov 100  }
 0x164   :  { %v280_v41 = vpop.f32.mrf.mxu0  ;;  %v478_v42 = vpop.f32.mrf.mxu1 }
 0x165   :  { %v289_v43 = vmax.f32 %v280_v41, 0.0  ;;  %v487_v44 = vmax.f32 %v478_v42, 0.0 }
 0x166   :  { %v282_v45 = vpop.f32.mrf.mxu0  ;;  %v480_v46 = vpop.f32.mrf.mxu1 }
 0x167   :  { %306 = vst.msk [vmem:[%s857_s4] sm:$0xff] %vm305_vm9, %v289_v43  ;;  %525 = vst.msk [vmem:[%s857_s4 + $0x30] sm:$0xff] %vm305_vm9, %v487_v44  ;;  %293 = vrot.lane.b32.xlu1 %v289_v43, %s681_s13 }
 0x16b   :  { %299 = vrot.lane.b32.xlu1 %v289_v43, %s682_s3 }
 0x16e   :  { %v285_v47 = vpop.f32.mrf.mxu0  ;;  %v483_v48 = vpop.f32.mrf.mxu1 }
 0x16f   :  { %v290_v49 = vmax.f32 %v285_v47, 0.0  ;;  %v488_v50 = vmax.f32 %v483_v48, 0.0  ;;  %491 = vrot.lane.b32.xlu1 %v487_v44, %s681_s13 }
 0x170   :  { %v287_v51 = vpop.f32.mrf.mxu0  ;;  %v485_v52 = vpop.f32.mrf.mxu1 }
 0x171   :  { %308 = vst.msk [vmem:[%s857_s4 + $0x8] sm:$0x3f] %vm307_vm10, %v290_v49  ;;  %526 = vst.msk [vmem:[%s857_s4 + $0x38] sm:$0x3f] %vm307_vm10, %v488_v50  ;;  %295 = vrot.lane.b32.xlu0 %v290_v49, %s681_s13 }
 0x173   :  { %497 = vrot.lane.b32.xlu1 %v487_v44, %s682_s3 }
 0x175   :  { %301 = vrot.lane.b32.xlu0 %v290_v49, %s682_s3 }
 0x179   :  { %493 = vrot.lane.b32.xlu0 %v488_v50, %s681_s13 }
 0x17d   :  { %499 = vrot.lane.b32.xlu0 %v488_v50, %s682_s3 }
 0x1d9   :  { %v294_v53 = vpop.permute.xlu1 %293 }
 0x1da   :  { %309 = vst.msk [vmem:[%s857_s4 + $0x10] sm:$0xff] %vm305_vm9, %v294_v53 }
 0x1dd   :  { %v300_v54 = vpop.permute.xlu1 %299 }
 0x1de   :  { %311 = vst.msk [vmem:[%s857_s4 + $0x20] sm:$0xff] %vm305_vm9, %v300_v54 }
 0x1e1   :  { %v492_v55 = vpop.permute.xlu1 %491 }
 0x1e2   :  { %527 = vst.msk [vmem:[%s857_s4 + $0x40] sm:$0xff] %vm305_vm9, %v492_v55 }
 0x1e3   :  { %v296_v56 = vpop.permute.xlu0 %295 }
 0x1e4   :  { %310 = vst.msk [vmem:[%s857_s4 + $0x18] sm:$0x3f] %vm307_vm10, %v296_v56 }
 0x1e5   :  { %v498_v57 = vpop.permute.xlu1 %497 }
 0x1e6   :  { %529 = vst.msk [vmem:[%s857_s4 + $0x50] sm:$0xff] %vm305_vm9, %v498_v57 }
 0x1e7   :  { %v302_v58 = vpop.permute.xlu0 %301 }
 0x1e8   :  { %312 = vst.msk [vmem:[%s857_s4 + $0x28] sm:$0x3f] %vm307_vm10, %v302_v58 }
 0x1eb   :  { %v494_v59 = vpop.permute.xlu0 %493 }
 0x1ec   :  { %528 = vst.msk [vmem:[%s857_s4 + $0x48] sm:$0x3f] %vm307_vm10, %v494_v59 }
 0x1ef   :  { %v500_v60 = vpop.permute.xlu0 %499 }
 0x1f0   :  { %530 = vst.msk [vmem:[%s857_s4 + $0x58] sm:$0x3f] %vm307_vm10, %v500_v60 }
 0x1f1   :  { %518 = vsyncpa [#allocation3], 1 }
 0x1f2   :  { %519 = vsyncpa [#allocation5], 1 }

</bundles_post_ra>
